<compile_context>
chip_gen: v7x
topology: tpu7x:2x2x1
jax: 0.10.0
libtpu: 0.0.40
codegen_flags: <defaults>
</compile_context>

<pallas_src>
import jax
import jax.numpy as jnp
from jax.experimental import pallas as pl
from jax.experimental.pallas import tpu as pltpu

VMEM = pltpu.MemorySpace.VMEM
SMEM = pltpu.MemorySpace.SMEM
_BN_EPS = 1e-5


# ------------------------- fused auxiliary-loss kernel ------------------------
def aux_loss_kernel(x_ref, w_ref, mask_ref, out_ref):
    # x_ref:    (2B, T, F)  stacked branch inputs, rows [:B]=click, [B:]=noclick
    #                       (each row block is cat([h_states, seq], -1))
    # w_ref:    (1, 1, F)   effective channel-0 weight (gamma folded in)
    # mask_ref: (B, T)
    # out_ref:  (1, 1)      scalar loss in SMEM
    x = x_ref[...].astype(jnp.float32)
    B2, T, F = x.shape
    B = B2 // 2

    def bn(v):
        # BatchNorm1d training mode over the B*T rows of ONE branch:
        # batch mean, biased variance, eps=1e-5.  (affine folded into w_ref)
        m = jnp.mean(jnp.mean(v, axis=1, keepdims=True), axis=0, keepdims=True)
        d = v - m
        var = jnp.mean(jnp.mean(d * d, axis=1, keepdims=True),
                       axis=0, keepdims=True)
        return d * jax.lax.rsqrt(var + _BN_EPS)

    w = w_ref[...]                                     # (1, 1, F)
    # Channel-0 logits: lane reduction over the F feature lanes -> (B, T).
    yc = jnp.sum(bn(x[:B]) * w, axis=-1)               # click branch
    yn = jnp.sum(bn(x[B:]) * w, axis=-1)               # noclick branch

    def time_softmax(y):                               # softmax over time axis
        e = jnp.exp(y - jnp.max(y, axis=-1, keepdims=True))
        inv = pl.reciprocal(jnp.sum(e, axis=-1, keepdims=True), approx=True)
        return e * inv

    pc = time_softmax(yc)                              # click_prop    (B, T)
    pn = time_softmax(yn)                              # noclick_prop  (B, T)

    mask = mask_ref[...].astype(jnp.float32)
    keep = mask != 0.0
    # Gate with where so masked positions never see log(0) -> inf * 0 = NaN.
    click_loss = jnp.where(keep, -jnp.log(pc) * mask, 0.0)
    noclick_loss = jnp.where(keep, -jnp.log(1.0 - pn) * mask, 0.0)
    out_ref[0, 0] = jnp.sum(click_loss + noclick_loss) * (1.0 / (B * T))


def auxiliary_loss_forward(params, h_states, click_seq, noclick_seq, mask):
    B, T, H = h_states.shape
    E = click_seq.shape[-1]
    F = H + E

    # Stack the two branch inputs in the wrapper (no in-kernel lane concats);
    # keep the caller's dtype, the kernel upcasts to f32 internally.
    x = jnp.concatenate(
        [jnp.concatenate([h_states, click_seq], axis=-1),
         jnp.concatenate([h_states, noclick_seq], axis=-1)], axis=0)  # (2B,T,F)

    # Constant-fold the whole parameter set into ONE effective weight vector:
    #   no nonlinearity between Linears      -> w1 @ w2 @ w3[:, 0:1]
    #   BN affine: (xhat*gamma+beta) @ W = xhat @ (gamma.T * W) + const
    #   every bias / beta term is a per-channel constant -> cancels in the
    #   softmax over time, so it is dropped.
    w_eff = params['w1'] @ params['w2'] @ params['w3'][:, 0:1]        # (F, 1)
    w_eff = (params['gamma'].reshape(-1, 1) * w_eff).astype(jnp.float32)
    w_eff = w_eff.reshape(1, 1, F)

    out = pl.pallas_call(
        aux_loss_kernel,
        out_shape=jax.ShapeDtypeStruct((1, 1), jnp.float32),
        in_specs=[pl.BlockSpec(memory_space=VMEM)] * 3,
        out_specs=pl.BlockSpec(memory_space=SMEM),
        compiler_params=pltpu.CompilerParams(
            vmem_limit_bytes=48 * 1024 * 1024),
    )(x, w_eff, mask)
    return out[0, 0]


# ------------------------------ pure-JAX reference ----------------------------
def auxiliary_loss_ref(params, h_states, click_seq, noclick_seq, mask):
    B, T, _ = h_states.shape

    def aux_net(x_seq):
        f = x_seq.shape[-1]
        x = x_seq.reshape(-1, f)
        m = jnp.mean(x, axis=0, keepdims=True)
        v = jnp.mean((x - m) ** 2, axis=0, keepdims=True)
        x = (x - m) / jnp.sqrt(v + _BN_EPS) * params['gamma'] + params['beta']
        y = x @ params['w1'] + params['b1']
        y = y @ params['w2'] + params['b2']
        y = y @ params['w3'] + params['b3']
        return jax.nn.softmax(y.reshape(B, T, 2), axis=1)

    click_prop = aux_net(jnp.concatenate([h_states, click_seq], -1))[:, :, 0]
    noclick_prop = aux_net(jnp.concatenate([h_states, noclick_seq], -1))[:, :, 0]
    click_loss = -jnp.log(click_prop) * mask
    noclick_loss = -jnp.log(1.0 - noclick_prop) * mask
    return jnp.mean(click_loss + noclick_loss)


# ------------------------------ parameter init --------------------------------
def init_params(key, hidden_size, emb_dim):
    input_size = hidden_size + emb_dim
    keys = jax.random.split(key, 6)

    def nrm(k, shape, scale=0.1):
        return jax.random.normal(k, shape, jnp.float32) * scale

    return dict(
        gamma=jnp.ones((1, input_size), jnp.float32),   # BN weight (init 1)
        beta=jnp.zeros((1, input_size), jnp.float32),   # BN bias   (init 0)
        w1=nrm(keys[0], (input_size, 100)), b1=nrm(keys[1], (1, 100)),
        w2=nrm(keys[2], (100, 50)),        b2=nrm(keys[3], (1, 50)),
        w3=nrm(keys[4], (50, 2)),          b3=nrm(keys[5], (1, 2)),
    )


if __name__ == "__main__":
    B, T = 2, 8
    H = 8     # GRU hidden size (2 * embedding_dim in DIEN)
    E = 24    # per-step embedding dim of the click / no-click sequences

    key = jax.random.PRNGKey(0)
    kp, kh, kc, kn = jax.random.split(key, 4)
    params = init_params(kp, H, E)

    h_states = jax.random.normal(kh, (B, T, H), jnp.float32)
    click_seq = jax.random.normal(kc, (B, T, E), jnp.float32)
    noclick_seq = jax.random.normal(kn, (B, T, E), jnp.float32)
    lengths = jnp.array([6, 8], jnp.int32)
    mask = (jnp.arange(T)[None, :] < lengths[:, None]).astype(jnp.float32)

    loss = jax.jit(auxiliary_loss_forward)(params, h_states, click_seq,
                                           noclick_seq, mask)
    jax.block_until_ready(loss)

    ref = auxiliary_loss_ref(params, h_states, click_seq, noclick_seq, mask)
    if not bool(jnp.allclose(loss, ref, rtol=1e-2, atol=1e-3)):
        raise SystemExit(f"MISMATCH kernel={float(loss)} ref={float(ref)}")
    print("KERNEL_OK")
</pallas_src>

<mosaic_0001>
module attributes {stable_mosaic.version = 11 : i64} {
  func.func @aux_loss_kernel(%arg0: memref<4x8x32xf32, #tpu.memory_space<vmem>>, %arg1: memref<1x1x32xf32, #tpu.memory_space<vmem>>, %arg2: memref<2x8xf32, #tpu.memory_space<vmem>>, %arg3: memref<1x1xf32, #tpu.memory_space<smem>>) attributes {dimension_semantics = [], scalar_prefetch = 0 : i64, scratch_operands = 0 : i64, tpu.core_type = #tpu.core_type<tc>} {
    %c0 = arith.constant 0 : index
    %c0_0 = arith.constant 0 : index
    %c0_1 = arith.constant 0 : index
    %0 = vector.load %arg0[%c0, %c0_0, %c0_1] : memref<4x8x32xf32, #tpu.memory_space<vmem>>, vector<4x8x32xf32>
    %c0_2 = arith.constant 0 : index
    %c0_3 = arith.constant 0 : index
    %c0_4 = arith.constant 0 : index
    %1 = vector.load %arg1[%c0_2, %c0_3, %c0_4] : memref<1x1x32xf32, #tpu.memory_space<vmem>>, vector<1x1x32xf32>
    %2 = vector.extract_strided_slice %0 {offsets = [0, 0, 0], sizes = [2, 8, 32], strides = [1, 1, 1]} : vector<4x8x32xf32> to vector<2x8x32xf32>
    %cst = arith.constant dense<0.000000e+00> : vector<2x32xf32>
    %3 = vector.multi_reduction <add>, %2, %cst [1] : vector<2x8x32xf32> to vector<2x32xf32>
    %4 = vector.shape_cast %3 : vector<2x32xf32> to vector<2x1x32xf32>
    %cst_5 = arith.constant 8.000000e+00 : f32
    %5 = vector.broadcast %cst_5 : f32 to vector<2x1x32xf32>
    %6 = arith.divf %4, %5 : vector<2x1x32xf32>
    %cst_6 = arith.constant dense<0.000000e+00> : vector<1x32xf32>
    %7 = vector.multi_reduction <add>, %6, %cst_6 [0] : vector<2x1x32xf32> to vector<1x32xf32>
    %8 = vector.shape_cast %7 : vector<1x32xf32> to vector<1x1x32xf32>
    %cst_7 = arith.constant 2.000000e+00 : f32
    %9 = vector.broadcast %cst_7 : f32 to vector<1x1x32xf32>
    %10 = arith.divf %8, %9 : vector<1x1x32xf32>
    %11 = vector.broadcast %10 : vector<1x1x32xf32> to vector<2x8x32xf32>
    %12 = arith.subf %2, %11 : vector<2x8x32xf32>
    %13 = arith.mulf %12, %12 : vector<2x8x32xf32>
    %cst_8 = arith.constant dense<0.000000e+00> : vector<2x32xf32>
    %14 = vector.multi_reduction <add>, %13, %cst_8 [1] : vector<2x8x32xf32> to vector<2x32xf32>
    %15 = vector.shape_cast %14 : vector<2x32xf32> to vector<2x1x32xf32>
    %cst_9 = arith.constant 8.000000e+00 : f32
    %16 = vector.broadcast %cst_9 : f32 to vector<2x1x32xf32>
    %17 = arith.divf %15, %16 : vector<2x1x32xf32>
    %cst_10 = arith.constant dense<0.000000e+00> : vector<1x32xf32>
    %18 = vector.multi_reduction <add>, %17, %cst_10 [0] : vector<2x1x32xf32> to vector<1x32xf32>
    %19 = vector.shape_cast %18 : vector<1x32xf32> to vector<1x1x32xf32>
    %cst_11 = arith.constant 2.000000e+00 : f32
    %20 = vector.broadcast %cst_11 : f32 to vector<1x1x32xf32>
    %21 = arith.divf %19, %20 : vector<1x1x32xf32>
    %cst_12 = arith.constant 9.99999974E-6 : f32
    %22 = vector.broadcast %cst_12 : f32 to vector<1x1x32xf32>
    %23 = arith.addf %21, %22 : vector<1x1x32xf32>
    %24 = math.rsqrt %23 : vector<1x1x32xf32>
    %25 = vector.broadcast %24 : vector<1x1x32xf32> to vector<2x8x32xf32>
    %26 = arith.mulf %12, %25 : vector<2x8x32xf32>
    %27 = vector.broadcast %1 : vector<1x1x32xf32> to vector<2x8x32xf32>
    %28 = arith.mulf %26, %27 : vector<2x8x32xf32>
    %cst_13 = arith.constant dense<0.000000e+00> : vector<2x8xf32>
    %29 = vector.multi_reduction <add>, %28, %cst_13 [2] : vector<2x8x32xf32> to vector<2x8xf32>
    %30 = vector.extract_strided_slice %0 {offsets = [2, 0, 0], sizes = [2, 8, 32], strides = [1, 1, 1]} : vector<4x8x32xf32> to vector<2x8x32xf32>
    %cst_14 = arith.constant dense<0.000000e+00> : vector<2x32xf32>
    %31 = vector.multi_reduction <add>, %30, %cst_14 [1] : vector<2x8x32xf32> to vector<2x32xf32>
    %32 = vector.shape_cast %31 : vector<2x32xf32> to vector<2x1x32xf32>
    %cst_15 = arith.constant 8.000000e+00 : f32
    %33 = vector.broadcast %cst_15 : f32 to vector<2x1x32xf32>
    %34 = arith.divf %32, %33 : vector<2x1x32xf32>
    %cst_16 = arith.constant dense<0.000000e+00> : vector<1x32xf32>
    %35 = vector.multi_reduction <add>, %34, %cst_16 [0] : vector<2x1x32xf32> to vector<1x32xf32>
    %36 = vector.shape_cast %35 : vector<1x32xf32> to vector<1x1x32xf32>
    %cst_17 = arith.constant 2.000000e+00 : f32
    %37 = vector.broadcast %cst_17 : f32 to vector<1x1x32xf32>
    %38 = arith.divf %36, %37 : vector<1x1x32xf32>
    %39 = vector.broadcast %38 : vector<1x1x32xf32> to vector<2x8x32xf32>
    %40 = arith.subf %30, %39 : vector<2x8x32xf32>
    %41 = arith.mulf %40, %40 : vector<2x8x32xf32>
    %cst_18 = arith.constant dense<0.000000e+00> : vector<2x32xf32>
    %42 = vector.multi_reduction <add>, %41, %cst_18 [1] : vector<2x8x32xf32> to vector<2x32xf32>
    %43 = vector.shape_cast %42 : vector<2x32xf32> to vector<2x1x32xf32>
    %cst_19 = arith.constant 8.000000e+00 : f32
    %44 = vector.broadcast %cst_19 : f32 to vector<2x1x32xf32>
    %45 = arith.divf %43, %44 : vector<2x1x32xf32>
    %cst_20 = arith.constant dense<0.000000e+00> : vector<1x32xf32>
    %46 = vector.multi_reduction <add>, %45, %cst_20 [0] : vector<2x1x32xf32> to vector<1x32xf32>
    %47 = vector.shape_cast %46 : vector<1x32xf32> to vector<1x1x32xf32>
    %cst_21 = arith.constant 2.000000e+00 : f32
    %48 = vector.broadcast %cst_21 : f32 to vector<1x1x32xf32>
    %49 = arith.divf %47, %48 : vector<1x1x32xf32>
    %cst_22 = arith.constant 9.99999974E-6 : f32
    %50 = vector.broadcast %cst_22 : f32 to vector<1x1x32xf32>
    %51 = arith.addf %49, %50 : vector<1x1x32xf32>
    %52 = math.rsqrt %51 : vector<1x1x32xf32>
    %53 = vector.broadcast %52 : vector<1x1x32xf32> to vector<2x8x32xf32>
    %54 = arith.mulf %40, %53 : vector<2x8x32xf32>
    %55 = vector.broadcast %1 : vector<1x1x32xf32> to vector<2x8x32xf32>
    %56 = arith.mulf %54, %55 : vector<2x8x32xf32>
    %cst_23 = arith.constant dense<0.000000e+00> : vector<2x8xf32>
    %57 = vector.multi_reduction <add>, %56, %cst_23 [2] : vector<2x8x32xf32> to vector<2x8xf32>
    %cst_24 = arith.constant dense<0xFF800000> : vector<2xf32>
    %58 = vector.multi_reduction <maximumf>, %29, %cst_24 [1] : vector<2x8xf32> to vector<2xf32>
    %59 = vector.shape_cast %58 : vector<2xf32> to vector<2x1xf32>
    %60 = vector.broadcast %59 : vector<2x1xf32> to vector<2x8xf32>
    %61 = arith.subf %29, %60 : vector<2x8xf32>
    %62 = math.exp %61 : vector<2x8xf32>
    %cst_25 = arith.constant dense<0.000000e+00> : vector<2xf32>
    %63 = vector.multi_reduction <add>, %62, %cst_25 [1] : vector<2x8xf32> to vector<2xf32>
    %64 = vector.shape_cast %63 : vector<2xf32> to vector<2x1xf32>
    %65 = tpu.reciprocal %64 {approx = true} : vector<2x1xf32> -> vector<2x1xf32>
    %66 = vector.broadcast %65 : vector<2x1xf32> to vector<2x8xf32>
    %67 = arith.mulf %62, %66 : vector<2x8xf32>
    %cst_26 = arith.constant dense<0xFF800000> : vector<2xf32>
    %68 = vector.multi_reduction <maximumf>, %57, %cst_26 [1] : vector<2x8xf32> to vector<2xf32>
    %69 = vector.shape_cast %68 : vector<2xf32> to vector<2x1xf32>
    %70 = vector.broadcast %69 : vector<2x1xf32> to vector<2x8xf32>
    %71 = arith.subf %57, %70 : vector<2x8xf32>
    %72 = math.exp %71 : vector<2x8xf32>
    %cst_27 = arith.constant dense<0.000000e+00> : vector<2xf32>
    %73 = vector.multi_reduction <add>, %72, %cst_27 [1] : vector<2x8xf32> to vector<2xf32>
    %74 = vector.shape_cast %73 : vector<2xf32> to vector<2x1xf32>
    %75 = tpu.reciprocal %74 {approx = true} : vector<2x1xf32> -> vector<2x1xf32>
    %76 = vector.broadcast %75 : vector<2x1xf32> to vector<2x8xf32>
    %77 = arith.mulf %72, %76 : vector<2x8xf32>
    %c0_28 = arith.constant 0 : index
    %c0_29 = arith.constant 0 : index
    %78 = vector.load %arg2[%c0_28, %c0_29] : memref<2x8xf32, #tpu.memory_space<vmem>>, vector<2x8xf32>
    %cst_30 = arith.constant 0.000000e+00 : f32
    %79 = vector.broadcast %cst_30 : f32 to vector<2x8xf32>
    %80 = arith.cmpf one, %78, %79 : vector<2x8xf32>
    %81 = math.log %67 : vector<2x8xf32>
    %cst_31 = arith.constant 0.000000e+00 : f32
    %82 = vector.broadcast %cst_31 : f32 to vector<2x8xf32>
    %83 = arith.subf %82, %81 : vector<2x8xf32>
    %84 = arith.mulf %83, %78 : vector<2x8xf32>
    %cst_32 = arith.constant 0.000000e+00 : f32
    %85 = vector.broadcast %cst_32 : f32 to vector<2x8xf32>
    %86 = arith.select %80, %84, %85 : vector<2x8xi1>, vector<2x8xf32>
    %cst_33 = arith.constant 1.000000e+00 : f32
    %87 = vector.broadcast %cst_33 : f32 to vector<2x8xf32>
    %88 = arith.subf %87, %77 : vector<2x8xf32>
    %89 = math.log %88 : vector<2x8xf32>
    %cst_34 = arith.constant 0.000000e+00 : f32
    %90 = vector.broadcast %cst_34 : f32 to vector<2x8xf32>
    %91 = arith.subf %90, %89 : vector<2x8xf32>
    %92 = arith.mulf %91, %78 : vector<2x8xf32>
    %cst_35 = arith.constant 0.000000e+00 : f32
    %93 = vector.broadcast %cst_35 : f32 to vector<2x8xf32>
    %94 = arith.select %80, %92, %93 : vector<2x8xi1>, vector<2x8xf32>
    %95 = arith.addf %86, %94 : vector<2x8xf32>
    %96 = vector.shape_cast %95 : vector<2x8xf32> to vector<1x2x8xf32>
    %cst_36 = arith.constant dense<0.000000e+00> : vector<1xf32>
    %97 = vector.multi_reduction <add>, %96, %cst_36 [1, 2] : vector<1x2x8xf32> to vector<1xf32>
    %98 = vector.shape_cast %97 : vector<1xf32> to vector<1x1x1xf32>
    %99 = vector.extract %98[0, 0, 0] : f32 from vector<1x1x1xf32>
    %cst_37 = arith.constant 6.250000e-02 : f32
    %100 = arith.mulf %99, %cst_37 : f32
    %c0_38 = arith.constant 0 : index
    %c0_39 = arith.constant 0 : index
    %101 = memref.load %arg3[%c0_38, %c0_39] : memref<1x1xf32, #tpu.memory_space<smem>>
    memref.store %100, %arg3[%c0_38, %c0_39] : memref<1x1xf32, #tpu.memory_space<smem>>
    return
  }
}

</mosaic_0001>

<bundles_post_ra>
// kernel: auxiliary_loss_forward.1
= control target key start
LH: loop header
LB: loop body
LE: loop exit
PB: predicated region body
PF: predicated region fallthrough
CT: control target
= control target key end

     0   :  { %vm20_vm0 = vcmask 261120   ;;  %s521_s0 = inlined_call_operand.vmem [shape: f32[4,8,32], index: 0, kind: input, shape index: {}]   ;;  %s522_s1 = inlined_call_operand.vmem [shape: f32[1,1,32], index: 1, kind: input, shape index: {}]   ;;  %s523_s2 = inlined_call_operand.vmem [shape: f32[2,8], index: 2, kind: input, shape index: {}]   ;;  %s524_s3 = inlined_call_operand.hbm [shape: f32[1,1], index: 3, kind: output, shape index: {}]  }
   0x1   :  { %v17_v0 = vld [vmem:[%s521_s0 + $0x10] sm:$0xff]  ;;  %v18_v1 = vld [vmem:[%s521_s0 + $0x18] sm:$0xff]  ;;  %v15_v4 = vld [vmem:[%s521_s0] sm:$0xff] }
   0x2   :  { %v85_v2 = vsel %vm20_vm0, %v17_v0, 0.0  ;;  %v92_v3 = vsel %vm20_vm0, %v18_v1, 0.0  ;;  %v16_v5 = vld [vmem:[%s521_s0 + $0x8] sm:$0xff] }
   0x3   :  { %8 = vsyncpa [#allocation3], 0  ;;  %v86_v6 = vrot.slane %v85_v2, 4  ;;  %v93_v7 = vrot.slane %v92_v3, 4  ;;  %v21_v8 = vsel %vm20_vm0, %v15_v4, 0.0  ;;  %v28_v9 = vsel %vm20_vm0, %v16_v5, 0.0 }
   0x4   :  { %v22_v10 = vrot.slane %v21_v8, 4  ;;  %v29_v11 = vrot.slane %v28_v9, 4  ;;  %vm153_vm1 = vcmask 1041409   ;;  %vm156_vm2 = vcmask 58368   ;;  %s412_s25 = scalar_lea.hbm %s524_s3, 16 }
   0x5   :  { %v87_v12 = vadd.f32 %v86_v6, %v85_v2  ;;  %v94_v13 = vadd.f32 %v93_v7, %v92_v3  ;;  %p413_p0 = scmp.ne.s32.totalorder %s524_s3, %s412_s25  ;;  %p416_p1 = scmp.lt.u32.totalorder %s412_s25, %s524_s3 }
   0x6   :  { %v23_v14 = vadd.f32 %v22_v10, %v21_v8  ;;  %v30_v15 = vadd.f32 %v29_v11, %v28_v9 }
   0x7   :  { %v88_v16 = vrot.slane %v87_v12, 2  ;;  %v95_v17 = vrot.slane %v94_v13, 2  ;;  %p418_p2 = pnand %p416_p1, %p413_p0 }
   0x8   :  { %v24_v18 = vrot.slane %v23_v14, 2  ;;  %v31_v19 = vrot.slane %v30_v15, 2 }
   0x9   :  { %v89_v20 = vadd.f32 %v88_v16, %v87_v12  ;;  %v96_v21 = vadd.f32 %v95_v17, %v94_v13 }
   0xa   :  { %v25_v22 = vadd.f32 %v24_v18, %v23_v14  ;;  %v32_v23 = vadd.f32 %v31_v19, %v30_v15 }
   0xb   :  { %v90_v24 = vrot.slane %v89_v20, 1  ;;  %v97_v25 = vrot.slane %v96_v21, 1 }
   0xc   :  { %v26_v26 = vrot.slane %v25_v22, 1  ;;  %v33_v27 = vrot.slane %v32_v23, 1 }
   0xd   :  { %v91_v28 = vadd.f32 %v90_v24, %v89_v20  ;;  %v98_v29 = vadd.f32 %v97_v25, %v96_v21 }
   0xe   :  { %v27_v30 = vadd.f32 %v26_v26, %v25_v22  ;;  %v34_v31 = vadd.f32 %v33_v27, %v32_v23 }
   0xf   :  { %v99_v32 = vmul.f32 0.125, %v91_v28  ;;  %v100_v33 = vmul.f32 0.125, %v98_v29 }
  0x10   :  { %v36_v34 = vmul.f32 0.125, %v27_v30  ;;  %v37_v35 = vmul.f32 0.125, %v34_v31  ;;  %v381_v31 = vld [vmem:[%s522_s1] ss:$0 sm:$0xff] }
  0x11   :  { %v101_v36 = vsel %vm20_vm0, %v99_v32, 0.0  ;;  %v102_v37 = vsel %vm20_vm0, %v100_v33, 0.0 }
  0x12   :  { %v103_v38 = vadd.f32 %v102_v37, %v101_v36  ;;  %v38_v39 = vsel %vm20_vm0, %v36_v34, 0.0  ;;  %v39_v40 = vsel %vm20_vm0, %v37_v35, 0.0 }
  0x13   :  { %v40_v41 = vadd.f32 %v39_v40, %v38_v39 }
  0x14   :  { %v104_v42 = vmul.f32 0.5, %v103_v38 }
  0x15   :  { %v42_v43 = vmul.f32 0.5, %v40_v41 }
  0x16   :  { %v105_v44 = vsub.f32 %v17_v0, %v104_v42  ;;  %v106_v45 = vsub.f32 %v18_v1, %v104_v42 }
  0x17   :  { %v43_v46 = vsub.f32 %v15_v4, %v42_v43  ;;  %v44_v47 = vsub.f32 %v16_v5, %v42_v43 }
  0x18   :  { %v107_v48 = vmul.f32 %v105_v44, %v105_v44  ;;  %v108_v49 = vmul.f32 %v106_v45, %v106_v45 }
  0x19   :  { %v45_v50 = vmul.f32 %v43_v46, %v43_v46  ;;  %v46_v51 = vmul.f32 %v44_v47, %v44_v47 }
  0x1a   :  { %v109_v52 = vsel %vm20_vm0, %v107_v48, 0.0  ;;  %v116_v53 = vsel %vm20_vm0, %v108_v49, 0.0 }
  0x1b   :  { %v110_v54 = vrot.slane %v109_v52, 4  ;;  %v117_v55 = vrot.slane %v116_v53, 4  ;;  %v47_v56 = vsel %vm20_vm0, %v45_v50, 0.0  ;;  %v54_v57 = vsel %vm20_vm0, %v46_v51, 0.0 }
  0x1c   :  { %v48_v58 = vrot.slane %v47_v56, 4  ;;  %v55_v59 = vrot.slane %v54_v57, 4 }
  0x1d   :  { %v111_v60 = vadd.f32 %v110_v54, %v109_v52  ;;  %v118_v61 = vadd.f32 %v117_v55, %v116_v53 }
  0x1e   :  { %v49_v62 = vadd.f32 %v48_v58, %v47_v56  ;;  %v56_v63 = vadd.f32 %v55_v59, %v54_v57 }
  0x1f   :  { %v112_v0 = vrot.slane %v111_v60, 2  ;;  %v119_v1 = vrot.slane %v118_v61, 2 }
  0x20   :  { %v50_v2 = vrot.slane %v49_v62, 2  ;;  %v57_v3 = vrot.slane %v56_v63, 2 }
  0x21   :  { %v113_v4 = vadd.f32 %v112_v0, %v111_v60  ;;  %v120_v5 = vadd.f32 %v119_v1, %v118_v61  ;;  %v424_v61 = vmov 0  }
  0x22   :  { %v51_v6 = vadd.f32 %v50_v2, %v49_v62  ;;  %v58_v7 = vadd.f32 %v57_v3, %v56_v63  ;;  %387 = vset.pattern.permute.xlu1 %v424_v61  ;;  %386 = vset.pattern.permute.xlu0 %v424_v61 }
  0x23   :  { %v114_v8 = vrot.slane %v113_v4, 1  ;;  %v121_v9 = vrot.slane %v120_v5, 1 }
  0x24   :  { %v52_v10 = vrot.slane %v51_v6, 1  ;;  %v59_v11 = vrot.slane %v58_v7, 1 }
  0x25   :  { %v115_v12 = vadd.f32 %v114_v8, %v113_v4  ;;  %v122_v13 = vadd.f32 %v121_v9, %v120_v5 }
  0x26   :  { %v53_v14 = vadd.f32 %v52_v10, %v51_v6  ;;  %v60_v15 = vadd.f32 %v59_v11, %v58_v7 }
  0x27   :  { %v123_v16 = vmul.f32 0.125, %v115_v12  ;;  %v124_v17 = vmul.f32 0.125, %v122_v13 }
  0x28   :  { %v61_v18 = vmul.f32 0.125, %v53_v14  ;;  %v62_v19 = vmul.f32 0.125, %v60_v15 }
  0x29   :  { %v125_v20 = vsel %vm20_vm0, %v123_v16, 0.0  ;;  %v126_v21 = vsel %vm20_vm0, %v124_v17, 0.0 }
  0x2a   :  { %v127_v22 = vadd.f32 %v126_v21, %v125_v20  ;;  %v63_v23 = vsel %vm20_vm0, %v61_v18, 0.0  ;;  %v64_v24 = vsel %vm20_vm0, %v62_v19, 0.0 }
  0x2b   :  { %v65_v25 = vadd.f32 %v64_v24, %v63_v23 }
  0x2c   :  { %v128_v26 = vmul.f32 0.5, %v127_v22 }
  0x2d   :  { %v66_v27 = vmul.f32 0.5, %v65_v25 }
  0x2e   :  { %v129_v28 = vadd.f32 1e-05, %v128_v26 }
  0x2f   :  { %v67_v29 = vadd.f32 1e-05, %v66_v27 }
  0x30   :  { %388 = vrsqrt.f32 %v129_v28 }
  0x31   :  { %390 = vrsqrt.f32 %v67_v29 }
  0x3a   :  { %v389_v30 = vpop.eup %388 }
  0x3b   :  { %v391_v32 = vpop.eup %390  ;;  %v131_v33 = vmul.f32 %v389_v30, %v105_v44  ;;  %v132_v34 = vmul.f32 %v389_v30, %v106_v45  ;;  %v143_v44 = vlaneseq  ;;  %v279_v30 = vld [vmem:[%s523_s2] sm:$0x3] }
  0x3c   :  { %v69_v35 = vmul.f32 %v391_v32, %v43_v46  ;;  %v70_v36 = vmul.f32 %v391_v32, %v44_v47  ;;  %vm280_vm3 = vcmp.ne.f32.partialorder %v279_v30, 0.0 }
  0x3d   :  { %v133_v37 = vmul.f32 %v381_v31, %v131_v33  ;;  %v134_v38 = vmul.f32 %v381_v31, %v132_v34  ;;  %v144_v45 = vand.u32 127, %v143_v44  ;;  %v146_v46 = vshrl.u32 %v143_v44, 7 }
  0x3e   :  { %v77_v39 = vmul.f32 %v381_v31, %v69_v35  ;;  %v78_v40 = vmul.f32 %v381_v31, %v70_v36 }
  0x3f   :  { %v135_v41 = vsel %vm20_vm0, %v133_v37, 0.0  ;;  %v138_v43 = vsel %vm20_vm0, %v134_v38, 0.0  ;;  %v481_v49 = vsub.s32 %v144_v45, %v146_v46  ;;  %v163_v62 = vsub.s32 0, %v146_v46 }
  0x40   :  { %136 = vadd.xlane.f32.xlu0 %v135_v41  ;;  %v79_v42 = vsel %vm20_vm0, %v77_v39, 0.0  ;;  %v82_v48 = vsel %vm20_vm0, %v78_v40, 0.0  ;;  %v167_v63 = vsub.s32 1, %v146_v46 }
  0x41   :  { %80 = vadd.xlane.f32.xlu1 %v79_v42  ;;  %v291_v31 = vrot.slane %v279_v30, %v163_v62 }
  0x42   :  { %v298_v32 = vrot.slane %v279_v30, %v167_v63 }
  0x44   :  { %139 = vadd.xlane.f32.xlu0 %v138_v43 }
  0x45   :  { %83 = vadd.xlane.f32.xlu1 %v82_v48 }
  0xcd   :  { %v137_v47 = vpop.xlane.xlu0 %136 }
  0xce   :  { %v81_v50 = vpop.xlane.xlu1 %80  ;;  %v217_v53 = vrot.slane %v137_v47, %v481_v49 }
  0xcf   :  { %v148_v51 = vrot.slane %v81_v50, %v481_v49 }
  0xd1   :  { %v140_v52 = vpop.xlane.xlu0 %139 }
  0xd2   :  { %v221_v54 = vrot.slane %v140_v52, %v481_v49  ;;  %v84_v55 = vpop.xlane.xlu1 %83 }
  0xd3   :  { %v152_v56 = vrot.slane %v84_v55, %v481_v49 }
  0xd4   :  { %v222_v57 = vsel %vm153_vm1, %v221_v54, %v217_v53 }
  0xd5   :  { %v224_v58 = vsel %vm156_vm2, %v222_v57, -inf  ;;  %v154_v59 = vsel %vm153_vm1, %v152_v56, %v148_v51 }
  0xd6   :  { %225 = vmax.xlane.f32.xlu0 %v224_v58  ;;  %v157_v60 = vsel %vm156_vm2, %v154_v59, -inf }
  0xd7   :  { %158 = vmax.xlane.f32.xlu1 %v157_v60 }
 0x163   :  { %v226_v0 = vpop.xlane.xlu0 %225 }
 0x164   :  { %v231_v1 = vrot.slane %v226_v0, %v163_v62  ;;  %v235_v2 = vrot.slane %v226_v0, %v167_v63  ;;  %v159_v3 = vpop.xlane.xlu1 %158 }
 0x165   :  { %v164_v4 = vrot.slane %v159_v3, %v163_v62  ;;  %v168_v7 = vrot.slane %v159_v3, %v167_v63 }
 0x166   :  { %v238_v5 = vsub.f32 %v137_v47, %v231_v1  ;;  %v239_v6 = vsub.f32 %v140_v52, %v235_v2 }
 0x167   :  { %v171_v8 = vsub.f32 %v81_v50, %v164_v4  ;;  %v172_v11 = vsub.f32 %v84_v55, %v168_v7 }
 0x168   :  { %v240_v9 = vmul.f32 1.442695, %v238_v5  ;;  %v242_v10 = vmul.f32 1.442695, %v239_v6 }
 0x169   :  { %v173_v12 = vmul.f32 1.442695, %v171_v8  ;;  %v175_v13 = vmul.f32 1.442695, %v172_v11 }
 0x16a   :  { %392 = vpow2.f32 %v240_v9 }
 0x16b   :  { %394 = vpow2.f32 %v242_v10 }
 0x16c   :  { %396 = vpow2.f32 %v173_v12 }
 0x16d   :  { %398 = vpow2.f32 %v175_v13 }
 0x174   :  { %v393_v14 = vpop.eup %392 }
 0x175   :  { %v395_v15 = vpop.eup %394  ;;  %247 = vperm.xlu0 %386, %v393_v14  }
 0x176   :  { %250 = vperm.xlu1 %387, %v395_v15   ;;  %v397_v16 = vpop.eup %396 }
 0x177   :  { %v399_v17 = vpop.eup %398 }
 0x17a   :  { %180 = vperm.xlu1 %387, %v397_v16  }
 0x17e   :  { %183 = vperm.xlu1 %387, %v399_v17  }
 0x1f4   :  { %v248_v18 = vpop.permute.xlu0 %247 }
 0x1f5   :  { %v255_v19 = vrot.slane %v248_v18, %v481_v49  ;;  %v251_v20 = vpop.permute.xlu1 %250 }
 0x1f6   :  { %v259_v21 = vrot.slane %v251_v20, %v481_v49 }
 0x1f8   :  { %v260_v22 = vsel %vm153_vm1, %v259_v21, %v255_v19 }
 0x1f9   :  { %v181_v23 = vpop.permute.xlu1 %180  ;;  %v262_v24 = vsel %vm156_vm2, %v260_v22, 0.0 }
 0x1fa   :  { %263 = vadd.xlane.f32.xlu1 %v262_v24  ;;  %v188_v26 = vrot.slane %v181_v23, %v481_v49 }
 0x1fd   :  { %v184_v25 = vpop.permute.xlu1 %183 }
 0x1fe   :  { %v192_v27 = vrot.slane %v184_v25, %v481_v49 }
 0x200   :  { %v193_v28 = vsel %vm153_vm1, %v192_v27, %v188_v26 }
 0x201   :  { %v195_v29 = vsel %vm156_vm2, %v193_v28, 0.0 }
 0x202   :  { %196 = vadd.xlane.f32.xlu0 %v195_v29 }
 0x20b   :  { %293 = vbcast.lane.b32.xlu1 %v291_v31, 256 }
 0x218   :  { %300 = vbcast.lane.b32.xlu0 %v298_v32, 256 }
 0x287   :  { %v264_v33 = vpop.xlane.xlu1 %263 }
 0x288   :  { %400 = vrcp.f32 %v264_v33 }
 0x28b   :  { %v294_v54 = vpop.permute.xlu1 %293 }
 0x28f   :  { %v197_v34 = vpop.xlane.xlu0 %196 }
 0x290   :  { %402 = vrcp.f32 %v197_v34 }
 0x292   :  { %v401_v35 = vpop.eup %400 }
 0x293   :  { %v270_v36 = vrot.slane %v401_v35, %v163_v62  ;;  %v274_v38 = vrot.slane %v401_v35, %v167_v63  ;;  %v301_v59 = vpop.permute.xlu0 %300 }
 0x295   :  { %v277_v39 = vmul.f32 %v393_v14, %v270_v36  ;;  %v278_v48 = vmul.f32 %v395_v15, %v274_v38 }
 0x297   :  { %v325_v44 = vsub.f32 1.0, %v277_v39  ;;  %v326_v45 = vsub.f32 1.0, %v278_v48 }
 0x29a   :  { %v403_v37 = vpop.eup %402 }
 0x29b   :  { %v207_v40 = vrot.slane %v403_v37, %v167_v63  ;;  %v203_v41 = vrot.slane %v403_v37, %v163_v62 }
 0x29d   :  { %v211_v42 = vmul.f32 %v399_v17, %v207_v40  ;;  %v210_v43 = vmul.f32 %v397_v16, %v203_v41 }
 0x29f   :  { %404 = vlog2.f32 %v211_v42 }
 0x2a0   :  { %406 = vlog2.f32 %v210_v43 }
 0x2a1   :  { %408 = vlog2.f32 %v325_v44 }
 0x2a2   :  { %410 = vlog2.f32 %v326_v45 }
 0x2a9   :  { %v405_v46 = vpop.eup %404 }
 0x2aa   :  { %v407_v47 = vpop.eup %406  ;;  %v284_v50 = vmul.f32 0.6931472, %v405_v46 }
 0x2ab   :  { %v282_v51 = vmul.f32 0.6931472, %v407_v47  ;;  %v409_v52 = vpop.eup %408 }
 0x2ac   :  { %v286_v55 = vsub.f32 0.0, %v284_v50  ;;  %v328_v56 = vmul.f32 0.6931472, %v409_v52  ;;  %v411_v58 = vpop.eup %410 }
 0x2ad   :  { %v285_v53 = vsub.f32 0.0, %v282_v51  ;;  %v330_v61 = vmul.f32 0.6931472, %v411_v58 }
 0x2ae   :  { %v305_v60 = vmul.f32 %v301_v59, %v286_v55  ;;  %v331_v62 = vsub.f32 0.0, %v328_v56 }
 0x2af   :  { %v304_v57 = vmul.f32 %v294_v54, %v285_v53  ;;  %v332_v63 = vsub.f32 0.0, %v330_v61 }
 0x2b0   :  { %v333_v0 = vmul.f32 %v331_v62, %v294_v54 }
 0x2b1   :  { %309 = vperm.xlu1 %387, %v304_v57   ;;  %v334_v1 = vmul.f32 %v332_v63, %v301_v59 }
 0x2b5   :  { %312 = vperm.xlu1 %387, %v305_v60  }
 0x2b9   :  { %338 = vperm.xlu1 %387, %v333_v0  }
 0x2bd   :  { %341 = vperm.xlu1 %387, %v334_v1  }
 0x330   :  { %v310_v2 = vpop.permute.xlu1 %309 }
 0x331   :  { %v317_v6 = vrot.slane %v310_v2, %v481_v49 }
 0x334   :  { %v313_v3 = vpop.permute.xlu1 %312 }
 0x335   :  { %v321_v5 = vrot.slane %v313_v3, %v481_v49 }
 0x337   :  { %v322_v10 = vsel %vm153_vm1, %v321_v5, %v317_v6 }
 0x338   :  { %v339_v4 = vpop.permute.xlu1 %338  ;;  %v324_v12 = vsel %vm280_vm3, %v322_v10, 0.0 }
 0x339   :  { %v346_v8 = vrot.slane %v339_v4, %v481_v49 }
 0x33c   :  { %v342_v7 = vpop.permute.xlu1 %341 }
 0x33d   :  { %v350_v9 = vrot.slane %v342_v7, %v481_v49 }
 0x33f   :  { %v351_v11 = vsel %vm153_vm1, %v350_v9, %v346_v8 }
 0x340   :  { %v353_v13 = vsel %vm280_vm3, %v351_v11, 0.0 }
 0x341   :  { %v354_v14 = vadd.f32 %v353_v13, %v324_v12 }
 0x343   :  { %v355_v15 = vsel %vm156_vm2, %v354_v14, 0.0 }
 0x344   :  { %356 = vadd.xlane.f32.xlu1 %v355_v15 }
 0x3d1   :  { %v357_v16 = vpop.xlane.xlu1 %356 }
 0x3d2   :  { %v358_v17 = vrot.slane %v357_v16, 4 }
 0x3d4   :  { %v359_v18 = vadd.f32 %v358_v17, %v357_v16 }
 0x3d6   :  { %v360_v19 = vrot.slane %v359_v18, 2 }
 0x3d8   :  { %v361_v20 = vadd.f32 %v360_v19, %v359_v18 }
 0x3da   :  { %v362_v21 = vrot.slane %v361_v20, 1 }
 0x3dc   :  { %v363_v22 = vadd.f32 %v362_v21, %v361_v20 }
 0x3de   :  { %382 = vpush %v363_v22 }
 0x40f   :  { %s383_s2 = spop %382 }
 0x410   :  { %s365_s22 = smul.f32 0.0625, %s383_s2 }
 0x412   :  { %367 = sst [smem:[#allocation2]] %s365_s22 }
 0x413   :  { %421 = shalt.err (!%p418_p2)
}
 0x414   :  { %s425_s30 = smov [#allocation2]  }
 0x415   :  { %375 = dma.smem_to_hbm %s425_s30, 16, %s524_s3, [#allocation3]  }
 0x416   :  { %422 = dma.done.wait [#allocation3], 16  }
 0x417   :  { %423 = vsyncadd [#allocation3], 4294967280 }
 0x418   :  { %379 = sfence }
 0x419   :  { %380 = vsyncpa [#allocation3], 1 }

</bundles_post_ra>
